<compile_context>
chip_gen: v6e
topology: v6e:2x2x1
jax: 0.10.0
libtpu: 0.0.40
codegen_flags: <defaults>
</compile_context>

<pallas_src>
import numpy as np
import jax
import jax.numpy as jnp
from jax.experimental import pallas as pl
from jax.experimental.pallas import tpu as pltpu


# ----------------------------------------------------------------------------
# Pallas kernel: one (row-block, output-column-tile, source-window-chunk) step.
# ----------------------------------------------------------------------------
def _pimog_kernel(kstart_ref, src_ref, x_ref, illum_ref, moire_ref, noise_ref,
                  o_ref, acc_ref):
    # kstart_ref : (num_col_tiles,) int32 SMEM  first source K-block of this tile's window
    # src_ref    : (1, TN)  int32   flat source pixel index per output pixel of this tile
    # x_ref      : (TM, KB) f32     one K-chunk of the flattened input rows
    # illum_ref  : (1, TN)  f32     illumination * (1 - moire_w)   (row-broadcast)
    # moire_ref  : (1, TN)  f32     moire_w * moire                (row-broadcast)
    # noise_ref  : (TM, TN) f32     additive gaussian noise
    # o_ref      : (TM, TN) f32     output tile
    # acc_ref    : (TM, TN) f32     VMEM accumulator for the windowed gather-matmul
    j = pl.program_id(1)          # output column tile
    k = pl.program_id(2)          # chunk within this tile's source window
    kb = x_ref.shape[1]
    tn = src_ref.shape[1]

    @pl.when(k == 0)
    def _():
        acc_ref[...] = jnp.zeros_like(acc_ref)

    # One-hot gather chunk built on the fly (exact 0/1 in bf16):
    #   onehot[s, t] = (chunk_base + s == src[t])
    chunk_base = (kstart_ref[j] + k) * kb
    rel = src_ref[...] - chunk_base                           # (1, TN) int32
    onehot = (jax.lax.broadcasted_iota(jnp.int32, (kb, tn), 0) == rel
              ).astype(jnp.bfloat16)                          # (KB, TN)

    # Perspective warp (nearest resample + reflection pad) == gather == chunked MXU matmul.
    acc_ref[...] += jnp.dot(x_ref[...].astype(jnp.bfloat16), onehot,
                            preferred_element_type=jnp.float32)

    @pl.when(k == pl.num_programs(2) - 1)
    def _():
        # Fused illumination multiply, moire blend, noise add, clamp(0, 1):
        #   clip(warp(x) * illum * (1-w) + w * moire + noise, 0, 1)
        o_ref[...] = jnp.clip(
            acc_ref[...] * illum_ref[...] + moire_ref[...] + noise_ref[...],
            0.0, 1.0)


# ----------------------------------------------------------------------------
# Wrapper: tiling, source-window computation, padding, pallas_call.
# ----------------------------------------------------------------------------
def _pick_tile(n: int) -> int:
    for t in (512, 256, 128):
        if n >= t:
            return t
    return 128


def _round_up(n: int, m: int) -> int:
    return ((n + m - 1) // m) * m


def pimog_augment(image, src_flat, illum, moire, noise, moire_weight):
    """image: (B, C, H, W) f32; src_flat: (H*W,) int32 warp source indices (host-visible);
    illum/moire: (H*W,) f32 shared patterns; noise: (B*C, H*W) f32; moire_weight: scalar.
    Returns the distorted image, same shape, clamped to [0, 1]."""
    B, C, H, W = image.shape
    BC, HW = B * C, H * W

    TN = _pick_tile(HW)                      # lane-dense output column tile
    KB = _pick_tile(HW)                      # source-window chunk (contraction tile)
    TM = min(128, _round_up(BC, 8))          # row block, multiple of 8 sublanes
    HWp = _round_up(HW, max(TN, KB))
    BCp = _round_up(BC, TM)

    # ---- host-side per-tile source-window extents (grid sizes must be static) ----
    # TODO(synk): the window extents require host-visible warp indices; src_flat is
    # produced by a host-side homography solve anyway, so this is not an extra sync
    # in practice.
    src_np = np.asarray(src_flat).astype(np.int32).reshape(HW)
    if HWp > HW:
        src_np = np.pad(src_np, (0, HWp - HW), mode="edge")
    num_j = HWp // TN
    total_kb = HWp // KB
    tiles = src_np.reshape(num_j, TN)
    lo_blk = tiles.min(axis=1) // KB
    hi_blk = tiles.max(axis=1) // KB
    nkb = int(max(1, int((hi_blk - lo_blk + 1).max())))
    nkb = min(nkb, total_kb)
    kstart = np.minimum(lo_blk, total_kb - nkb).astype(np.int32)   # window always in range

    # ---- traced data prep (moire_weight stays traced: no recompiles, no host sync) ----
    w = jnp.asarray(moire_weight, jnp.float32)
    x = image.reshape(BC, HW).astype(jnp.float32)
    illum_eff = illum.reshape(1, HW).astype(jnp.float32) * (1.0 - w)   # O(HW), cheap
    moire_w = moire.reshape(1, HW).astype(jnp.float32) * w             # O(HW), cheap
    noise2d = noise.reshape(BC, HW).astype(jnp.float32)
    src2d = jnp.asarray(src_np).reshape(1, HWp)

    if HWp > HW:
        lane_pad = ((0, 0), (0, HWp - HW))
        x = jnp.pad(x, lane_pad)
        illum_eff = jnp.pad(illum_eff, lane_pad)
        moire_w = jnp.pad(moire_w, lane_pad)
        noise2d = jnp.pad(noise2d, lane_pad)
    if BCp > BC:
        row_pad = ((0, BCp - BC), (0, 0))
        x = jnp.pad(x, row_pad)
        noise2d = jnp.pad(noise2d, row_pad)

    # ---- VMEM budget: double-buffered streams + in-kernel one-hot/matmul temporaries ----
    need = (2 * (4 * TN                     # src tile (int32)
                 + 4 * TM * KB              # x chunk
                 + 2 * 4 * TN               # illum_eff + moire_w tiles
                 + 2 * 4 * TM * TN)         # noise + out tiles
            + 4 * TM * TN                   # f32 accumulator scratch
            + 10 * KB * TN                  # iota + bool + bf16 one-hot temporaries
            + 2 * TM * KB)                  # bf16 x cast
    try:
        phys = int(pltpu.get_tpu_info().vmem_capacity_bytes)
    except Exception:
        phys = 64 << 20                     # conservative: v7x per-TC VMEM
    cap = max(phys - (16 << 20), 16 << 20)
    vmem_bytes = max(16 << 20, min(int(need * 1.5) + (2 << 20), cap))

    grid_spec = pltpu.PrefetchScalarGridSpec(
        num_scalar_prefetch=1,
        grid=(BCp // TM, num_j, nkb),
        in_specs=[
            pl.BlockSpec((1, TN), lambda i, j, k, ks: (0, j)),            # src indices
            pl.BlockSpec((TM, KB), lambda i, j, k, ks: (i, ks[j] + k)),   # x window chunk
            pl.BlockSpec((1, TN), lambda i, j, k, ks: (0, j)),            # illum * (1-w)
            pl.BlockSpec((1, TN), lambda i, j, k, ks: (0, j)),            # w * moire
            pl.BlockSpec((TM, TN), lambda i, j, k, ks: (i, j)),           # noise
        ],
        out_specs=pl.BlockSpec((TM, TN), lambda i, j, k, ks: (i, j)),
        scratch_shapes=[pltpu.VMEM((TM, TN), jnp.float32)],
    )

    out = pl.pallas_call(
        _pimog_kernel,
        out_shape=jax.ShapeDtypeStruct((BCp, HWp), jnp.float32),
        grid_spec=grid_spec,
        compiler_params=pltpu.CompilerParams(
            dimension_semantics=("parallel", "parallel", "arbitrary"),
            vmem_limit_bytes=vmem_bytes,
        ),
    )(jnp.asarray(kstart), src2d, x, illum_eff, moire_w, noise2d)

    if BCp == BC and HWp == HW:
        return out.reshape(B, C, H, W)       # no padding -> no extra slice/copy pass
    return out[:BC, :HW].reshape(B, C, H, W)


# ----------------------------------------------------------------------------
# Pure-JAX reference (for correctness checking).
# ----------------------------------------------------------------------------
def pimog_reference(image, src_flat, illum, moire, noise, moire_weight):
    B, C, H, W = image.shape
    x = image.reshape(B * C, H * W).astype(jnp.float32)
    warped = jnp.take(x, jnp.asarray(src_flat, jnp.int32), axis=1)
    w = jnp.asarray(moire_weight, jnp.float32)
    out = (warped * illum[None, :]) * (1.0 - w) + w * moire[None, :] + noise
    return jnp.clip(out, 0.0, 1.0).reshape(B, C, H, W)


# ----------------------------------------------------------------------------
# Glue: deterministic distortion-parameter construction (plain numpy / JAX).
# ----------------------------------------------------------------------------
def _reflect_index(idx, n):
    """Reflect indices into [0, n-1] without repeating the edge ('reflection' padding)."""
    period = max(2 * (n - 1), 1)
    idx = np.abs(idx) % period
    return np.where(idx > n - 1, period - idx, idx)


def _homography_from_corners(src_pts, dst_pts):
    """Solve 3x3 homography mapping src (x,y) -> dst (x,y) via DLT (8x8 system)."""
    A, b = [], []
    for (x, y), (u, v) in zip(src_pts, dst_pts):
        A.append([x, y, 1, 0, 0, 0, -u * x, -u * y]); b.append(u)
        A.append([0, 0, 0, x, y, 1, -v * x, -v * y]); b.append(v)
    h = np.linalg.solve(np.asarray(A, np.float64), np.asarray(b, np.float64))
    return np.concatenate([h, [1.0]]).reshape(3, 3)


def build_distortion_params(key, B, C, H, W,
                            perspective_scale=0.5,
                            moire_weight_bound=0.15,
                            noise_std=0.01):
    """Build warp source indices, illumination map, moire map, noise, moire weight."""
    # TODO(synk): RandomPerspective / Illumination / Moire submodule sources were not
    # provided; their exact sampling distributions are approximated with deterministic
    # equivalents (same structure: homography warp, multiplicative light map, sinusoid blend).
    HW = H * W
    BC = B * C
    k_persp, k_ill, k_moire, k_w, k_noise = jax.random.split(key, 5)

    # --- Perspective: perturb the 4 corners, fit a backward homography, build flat indices.
    max_off = perspective_scale * min(H, W) / 4.0
    offsets = np.asarray(
        jax.random.uniform(k_persp, (4, 2), minval=-max_off, maxval=max_off))
    out_corners = np.array([[0, 0], [W - 1, 0], [W - 1, H - 1], [0, H - 1]], np.float64)
    src_corners = out_corners + offsets
    Hm = _homography_from_corners(out_corners, src_corners)  # output (x,y) -> source (x,y)

    ys, xs = np.meshgrid(np.arange(H), np.arange(W), indexing="ij")
    pts = np.stack([xs.ravel(), ys.ravel(), np.ones(HW)], axis=0)  # (3, HW)
    src = Hm @ pts
    sx = np.rint(src[0] / src[2]).astype(np.int64)   # nearest resampling
    sy = np.rint(src[1] / src[2]).astype(np.int64)
    sx = _reflect_index(sx, W)
    sy = _reflect_index(sy, H)
    src_flat = (sy * W + sx).astype(np.int32)        # (HW,) source index per output pixel

    # --- Illumination: radial light pattern in [0.65, 1.0], shared across batch/channels.
    cyx = np.asarray(jax.random.uniform(k_ill, (2,), minval=0.3, maxval=0.7))
    cy, cx = cyx[0] * (H - 1), cyx[1] * (W - 1)
    dist = np.sqrt((ys - cy) ** 2 + (xs - cx) ** 2)
    dist = dist / max(dist.max(), 1e-6)
    illum = (1.0 - 0.35 * dist).astype(np.float32).reshape(HW)

    # --- Moire: sinusoidal stripe pattern in [0, 1], shared across batch/channels.
    freqs = np.asarray(jax.random.uniform(k_moire, (3,), minval=1.0, maxval=4.0))
    fy, fx, phase = float(freqs[0]), float(freqs[1]), float(freqs[2])
    moire = (0.5 + 0.5 * np.sin(2.0 * np.pi * (fy * ys / H + fx * xs / W) + phase))
    moire = moire.astype(np.float32).reshape(HW)

    # --- Moire blend weight in [0, moire_weight_bound] (kept as a traced JAX scalar).
    moire_weight = jax.random.uniform(k_w, (), minval=0.0, maxval=moire_weight_bound)

    # --- Gaussian noise, std = noise_std, per element.
    noise = jax.random.normal(k_noise, (BC, HW), dtype=jnp.float32) * noise_std

    return (src_flat, jnp.asarray(illum), jnp.asarray(moire), noise, moire_weight)


# ----------------------------------------------------------------------------
if __name__ == "__main__":
    key = jax.random.PRNGKey(0)
    k_img, k_dist = jax.random.split(key)

    B, C, H, W = 2, 4, 16, 16
    image = jax.random.uniform(k_img, (B, C, H, W), dtype=jnp.float32)

    src_flat, illum, moire, noise, mw = build_distortion_params(k_dist, B, C, H, W)

    out = pimog_augment(image, src_flat, illum, moire, noise, mw)
    out = jax.block_until_ready(out)

    assert out.shape == (B, C, H, W)
    assert out.dtype == jnp.float32
    assert float(jnp.min(out)) >= 0.0 and float(jnp.max(out)) <= 1.0

    ref = jax.block_until_ready(pimog_reference(image, src_flat, illum, moire, noise, mw))
    max_err = float(jnp.max(jnp.abs(out - ref)))
    assert max_err < 2e-2, f"mismatch vs reference: {max_err}"   # bf16 warp rounding only

    print("KERNEL_OK")
</pallas_src>

<mosaic_0001>
module attributes {stable_mosaic.version = 11 : i64} {
  func.func @_pimog_kernel(%arg0: i32, %arg1: i32, %arg2: i32, %arg3: memref<1xi32, #tpu.memory_space<smem>>, %arg4: memref<1x256xi32, #tpu.memory_space<vmem>>, %arg5: memref<8x256xf32, #tpu.memory_space<vmem>>, %arg6: memref<1x256xf32, #tpu.memory_space<vmem>>, %arg7: memref<1x256xf32, #tpu.memory_space<vmem>>, %arg8: memref<8x256xf32, #tpu.memory_space<vmem>>, %arg9: memref<8x256xf32, #tpu.memory_space<vmem>>, %arg10: memref<8x256xf32, #tpu.memory_space<vmem>>) attributes {dimension_semantics = [#tpu.dimension_semantics<parallel>, #tpu.dimension_semantics<parallel>, #tpu.dimension_semantics<arbitrary>], iteration_bounds = array<i64: 1, 1, 1>, scalar_prefetch = 1 : i64, scratch_operands = 1 : i64, tpu.core_type = #tpu.core_type<tc>, window_params = [{transform_indices = @transform_0, window_bounds = array<i64: 1, 256>}, {transform_indices = @transform_1, window_bounds = array<i64: 8, 256>}, {transform_indices = @transform_2, window_bounds = array<i64: 1, 256>}, {transform_indices = @transform_3, window_bounds = array<i64: 1, 256>}, {transform_indices = @transform_4, window_bounds = array<i64: 8, 256>}, {transform_indices = @transform_5, window_bounds = array<i64: 8, 256>}]} {
    %c0_i32 = arith.constant 0 : i32
    %0 = arith.cmpi eq, %arg2, %c0_i32 : i32
    %1 = arith.extui %0 : i1 to i32
    %c0_i32_0 = arith.constant 0 : i32
    %2 = arith.cmpi ne, %1, %c0_i32_0 : i32
    scf.if %2 {
      %cst_10 = arith.constant 0.000000e+00 : f32
      %25 = vector.broadcast %cst_10 : f32 to vector<8x256xf32>
      %c0_11 = arith.constant 0 : index
      %c0_12 = arith.constant 0 : index
      %26 = vector.load %arg10[%c0_11, %c0_12] : memref<8x256xf32, #tpu.memory_space<vmem>>, vector<8x256xf32>
      tpu.vector_store %arg10[%c0_11, %c0_12], %25 {strides = array<i32>} : memref<8x256xf32, #tpu.memory_space<vmem>>, vector<8x256xf32>,
    } else {
    }
    %3 = arith.index_cast %arg1 : i32 to index
    %4 = memref.load %arg3[%3] : memref<1xi32, #tpu.memory_space<smem>>
    %5 = arith.addi %4, %arg2 : i32
    %c256_i32 = arith.constant 256 : i32
    %6 = arith.muli %5, %c256_i32 : i32
    %c0 = arith.constant 0 : index
    %c0_1 = arith.constant 0 : index
    %7 = vector.load %arg4[%c0, %c0_1] : memref<1x256xi32, #tpu.memory_space<vmem>>, vector<1x256xi32>
    %8 = vector.broadcast %6 : i32 to vector<1x256xi32>
    %9 = arith.subi %7, %8 : vector<1x256xi32>
    %10 = tpu.iota {dimensions = array<i32: 0>} : vector<256x256xi32>
    %11 = vector.broadcast %9 : vector<1x256xi32> to vector<256x256xi32>
    %12 = arith.cmpi eq, %10, %11 : vector<256x256xi32>
    %13 = arith.extui %12 : vector<256x256xi1> to vector<256x256xi32>
    %14 = arith.sitofp %13 : vector<256x256xi32> to vector<256x256xf32>
    %15 = arith.truncf %14 : vector<256x256xf32> to vector<256x256xbf16>
    %c0_2 = arith.constant 0 : index
    %c0_3 = arith.constant 0 : index
    %16 = vector.load %arg10[%c0_2, %c0_3] : memref<8x256xf32, #tpu.memory_space<vmem>>, vector<8x256xf32>
    %c0_4 = arith.constant 0 : index
    %c0_5 = arith.constant 0 : index
    %17 = vector.load %arg5[%c0_4, %c0_5] : memref<8x256xf32, #tpu.memory_space<vmem>>, vector<8x256xf32>
    %18 = arith.truncf %17 : vector<8x256xf32> to vector<8x256xbf16>
    %cst = arith.constant dense<0.000000e+00> : vector<8x256xf32>
    %19 = tpu.matmul %18, %15, %cst {dimension_numbers = #tpu.dot_dimension_numbers<[1], [0], [0], [1], [0, 0, 1, 1], [], []>} : vector<8x256xbf16>, vector<256x256xbf16>, vector<8x256xf32> -> vector<8x256xf32>
    %20 = arith.addf %16, %19 : vector<8x256xf32>
    %c0_6 = arith.constant 0 : index
    %c0_7 = arith.constant 0 : index
    %21 = vector.load %arg10[%c0_6, %c0_7] : memref<8x256xf32, #tpu.memory_space<vmem>>, vector<8x256xf32>
    tpu.vector_store %arg10[%c0_6, %c0_7], %20 {strides = array<i32>} : memref<8x256xf32, #tpu.memory_space<vmem>>, vector<8x256xf32>,
    %c0_i32_8 = arith.constant 0 : i32
    %22 = arith.cmpi eq, %arg2, %c0_i32_8 : i32
    %23 = arith.extui %22 : i1 to i32
    %c0_i32_9 = arith.constant 0 : i32
    %24 = arith.cmpi ne, %23, %c0_i32_9 : i32
    scf.if %24 {
      %c0_10 = arith.constant 0 : index
      %c0_11 = arith.constant 0 : index
      %25 = vector.load %arg10[%c0_10, %c0_11] : memref<8x256xf32, #tpu.memory_space<vmem>>, vector<8x256xf32>
      %c0_12 = arith.constant 0 : index
      %c0_13 = arith.constant 0 : index
      %26 = vector.load %arg6[%c0_12, %c0_13] : memref<1x256xf32, #tpu.memory_space<vmem>>, vector<1x256xf32>
      %27 = vector.broadcast %26 : vector<1x256xf32> to vector<8x256xf32>
      %28 = arith.mulf %25, %27 : vector<8x256xf32>
      %c0_14 = arith.constant 0 : index
      %c0_15 = arith.constant 0 : index
      %29 = vector.load %arg7[%c0_14, %c0_15] : memref<1x256xf32, #tpu.memory_space<vmem>>, vector<1x256xf32>
      %30 = vector.broadcast %29 : vector<1x256xf32> to vector<8x256xf32>
      %31 = arith.addf %28, %30 : vector<8x256xf32>
      %c0_16 = arith.constant 0 : index
      %c0_17 = arith.constant 0 : index
      %32 = vector.load %arg8[%c0_16, %c0_17] : memref<8x256xf32, #tpu.memory_space<vmem>>, vector<8x256xf32>
      %33 = arith.addf %31, %32 : vector<8x256xf32>
      %cst_18 = arith.constant 0.000000e+00 : f32
      %cst_19 = arith.constant 1.000000e+00 : f32
      %34 = vector.broadcast %cst_18 : f32 to vector<8x256xf32>
      %35 = arith.maximumf %34, %33 : vector<8x256xf32>
      %36 = vector.broadcast %cst_19 : f32 to vector<8x256xf32>
      %37 = arith.minimumf %36, %35 : vector<8x256xf32>
      %c0_20 = arith.constant 0 : index
      %c0_21 = arith.constant 0 : index
      %38 = vector.load %arg9[%c0_20, %c0_21] : memref<8x256xf32, #tpu.memory_space<vmem>>, vector<8x256xf32>
      tpu.vector_store %arg9[%c0_20, %c0_21], %37 {strides = array<i32>} : memref<8x256xf32, #tpu.memory_space<vmem>>, vector<8x256xf32>,
    } else {
    }
    return
  }
  func.func @transform_0(%arg0: i32, %arg1: i32, %arg2: i32, %arg3: memref<1xi32, #tpu.memory_space<smem>>) -> (i32, i32) {
    %c0_i32 = arith.constant 0 : i32
    %c0_i32_0 = arith.constant 0 : i32
    return %c0_i32, %arg1 : i32, i32
  }
  func.func @transform_1(%arg0: i32, %arg1: i32, %arg2: i32, %arg3: memref<1xi32, #tpu.memory_space<smem>>) -> (i32, i32) {
    %0 = arith.index_cast %arg1 : i32 to index
    %1 = memref.load %arg3[%0] : memref<1xi32, #tpu.memory_space<smem>>
    %2 = arith.addi %1, %arg2 : i32
    %c0_i32 = arith.constant 0 : i32
    return %arg0, %2 : i32, i32
  }
  func.func @transform_2(%arg0: i32, %arg1: i32, %arg2: i32, %arg3: memref<1xi32, #tpu.memory_space<smem>>) -> (i32, i32) {
    %c0_i32 = arith.constant 0 : i32
    %c0_i32_0 = arith.constant 0 : i32
    return %c0_i32, %arg1 : i32, i32
  }
  func.func @transform_3(%arg0: i32, %arg1: i32, %arg2: i32, %arg3: memref<1xi32, #tpu.memory_space<smem>>) -> (i32, i32) {
    %c0_i32 = arith.constant 0 : i32
    %c0_i32_0 = arith.constant 0 : i32
    return %c0_i32, %arg1 : i32, i32
  }
  func.func @transform_4(%arg0: i32, %arg1: i32, %arg2: i32, %arg3: memref<1xi32, #tpu.memory_space<smem>>) -> (i32, i32) {
    %c0_i32 = arith.constant 0 : i32
    return %arg0, %arg1 : i32, i32
  }
  func.func @transform_5(%arg0: i32, %arg1: i32, %arg2: i32, %arg3: memref<1xi32, #tpu.memory_space<smem>>) -> (i32, i32) {
    %c0_i32 = arith.constant 0 : i32
    return %arg0, %arg1 : i32, i32
  }
}

</mosaic_0001>

<bundles_post_ra>
// kernel: tpu_custom_call.1
= control target key start
LH: loop header
LB: loop body
LE: loop exit
PB: predicated region body
PF: predicated region fallthrough
CT: control target
= control target key end

     0   :  { %12 = vsyncpa [#allocation6], 0  ;;  %s869_s0 = inlined_call_operand.<no memory space> [shape: s32[1], index: 0, kind: input, shape index: {}]   ;;  %s870_s1 = inlined_call_operand.vmem [shape: s32[1,256], index: 1, kind: input, shape index: {}]   ;;  %s871_s2 = inlined_call_operand.hbm [shape: f32[8,256], index: 2, kind: input, shape index: {}]   ;;  %s872_s3 = inlined_call_operand.vmem [shape: f32[1,256], index: 3, kind: input, shape index: {}]   ;;  %s873_s4 = inlined_call_operand.vmem [shape: f32[1,256], index: 4, kind: input, shape index: {}]   ;;  %s874_s5 = inlined_call_operand.hbm [shape: f32[8,256], index: 5, kind: input, shape index: {}]   ;;  %s875_s6 = inlined_call_operand.hbm [shape: f32[8,256], index: 6, kind: output, shape index: {}]  }
   0x1   :  { %13 = vsyncpa [#allocation9], 0 }
   0x2   :  { %14 = vsyncpa [#allocation7], 0  ;;  %s575_s23 = sshll.u32 %s869_s0, 8  ;;  %s648_s29 = smov [#allocation5]  }
   0x3   :  { %s26_s28 = scalar_lea.hbm %s871_s2, %s575_s23  ;;  %s28_s30 = sshll.u32 %s648_s29, 4  ;;  %s29_s30 = int_to_ptr.vmem [resolvable:$true] %s28_s30 }
   0x4   :  { %s580_s7 = scalar_lea.hbm %s26_s28, 256  ;;  %s582_s10 = scalar_lea.hbm %s871_s2, 256 }
   0x5   :  { %p581_p0 = scmp.ne.s32.totalorder %s26_s28, %s580_s7  ;;  %p583_p1 = scmp.lt.s32.totalorder %s26_s28, %s871_s2 }
   0x6   :  { %p584_p2 = scmp.lt.s32.totalorder %s582_s10, %s580_s7 }
   0x8   :  { %p585_p3 = por %p584_p2, %p583_p1 }
   0xa   :  { %p586_p4 = pnand %p585_p3, %p581_p0 }
   0xc   :  { %589 = shalt.err (!%p586_p4)
}
   0xd   :  { %s590_s13 = scalar_lea.vmem %s29_s30, 256  ;;  %p595_p6 = scmp.lt.s32.totalorder %s29_s30, %s29_s30 }
   0xe   :  { %p591_p5 = scmp.ne.s32.totalorder %s29_s30, %s590_s13  ;;  %p596_p7 = scmp.lt.s32.totalorder %s590_s13, %s590_s13 }
  0x10   :  { %p597_p8 = por %p596_p7, %p595_p6 }
  0x12   :  { %p598_p9 = pnand %p597_p8, %p591_p5 }
  0x14   :  { %601 = shalt.err (!%p598_p9)
}
  0x15   :  { %31 = dma.hbm_to_vmem [thread:$0]  %s26_s28, 256, %s29_s30, [#allocation6]  }
  0x16   :  { %s649_s14 = smov [#allocation8]  }
  0x17   :  { %s42_s15 = sshll.u32 %s649_s14, 4  ;;  %s43_s15 = int_to_ptr.vmem [resolvable:$true] %s42_s15 }
  0x18   :  { %s610_s16 = scalar_lea.vmem %s43_s15, 256  ;;  %p615_p11 = scmp.lt.s32.totalorder %s43_s15, %s43_s15 }
  0x19   :  { %p611_p10 = scmp.ne.s32.totalorder %s43_s15, %s610_s16  ;;  %p616_p12 = scmp.lt.s32.totalorder %s610_s16, %s610_s16 }
  0x1b   :  { %p617_p13 = por %p616_p12, %p615_p11 }
  0x1d   :  { %p618_p1 = pnand %p617_p13, %p611_p10 }
  0x1f   :  { %621 = shalt.err (!%p618_p1)
}
  0x20   :  { %45 = dma.hbm_to_vmem [thread:$0]  %s874_s5, 256, %s43_s15, [#allocation9]  }
  0x21   :  { %642 = dma.done.wait [#allocation6], 256  }
  0x22   :  { %643 = vsyncadd [#allocation6], 4294967040 }
  0x23   :  { %644 = dma.done.wait [#allocation9], 256  }
  0x24   :  { %645 = vsyncadd [#allocation9], 4294967040  ;;  %v67_v0 = vlaneseq  ;;  %v65_v2 = vstv %s575_s23  ;;  %v64_v5 = vld [vmem:[%s870_s1] sm:$0x3]  ;;  %v650_v15 = vmov 1.0|1.0  }
  0x25   :  { %v66_v6 = vsub.s32 %v64_v5, %v65_v2  ;;  %v335_v22 = vld [vmem:[#allocation5 + $0x8] sm:$0xff]  ;;  %v334_v43 = vld [vmem:[#allocation5] sm:$0xff]  ;;  %v416_v53 = vld [vmem:[#allocation8] sm:$0xff] }
  0x26   :  { %v706_v1 = vshrl.u32 %v67_v0, 7  ;;  %v337_v25 = vpack.c.bf16 %v335_v22, %v335_v22  ;;  %v336_v44 = vpack.c.bf16 %v334_v43, %v334_v43  ;;  %v388_v45 = vld [vmem:[%s872_s3] sm:$0x3]  ;;  %v417_v57 = vld [vmem:[#allocation8 + $0x8] sm:$0xff]  ;;  %s651_s3 = smov [#allocation10]  }
  0x27   :  { %v402_v46 = vld [vmem:[%s873_s4] sm:$0x3]  ;;  %s432_s4 = sshll.u32 %s651_s3, 4  ;;  %s433_s4 = int_to_ptr.vmem [resolvable:$true] %s432_s4 }
  0x28   :  { %v713_v3 = vsub.s32 0, %v706_v1  ;;  %v716_v4 = vsub.s32 1, %v706_v1  ;;  %v82_v7 = vadd.s32 112, %v706_v1  ;;  %v83_v8 = vadd.s32 120, %v706_v1  ;;  %370 = vmatprep.mubr.bf16.mxu0 %v337_v25  ;;  %s622_s23 = scalar_lea.vmem %s433_s4, 256  ;;  %p627_p2 = scmp.lt.s32.totalorder %s433_s4, %s433_s4 }
  0x29   :  { %v80_v9 = vadd.s32 96, %v706_v1  ;;  %v81_v10 = vadd.s32 104, %v706_v1  ;;  %v78_v13 = vadd.s32 80, %v706_v1  ;;  %v79_v14 = vadd.s32 88, %v706_v1  ;;  %p623_p0 = scmp.ne.s32.totalorder %s433_s4, %s622_s23  ;;  %p628_p3 = scmp.lt.s32.totalorder %s622_s23, %s622_s23 }
  0x2a   :  { %v726_v11 = vrot.slane %v66_v6, %v713_v3  ;;  %v729_v12 = vrot.slane %v66_v6, %v716_v4  ;;  %v76_v16 = vadd.s32 64, %v706_v1  ;;  %v77_v17 = vadd.s32 72, %v706_v1 }
  0x2b   :  { %v74_v18 = vadd.s32 48, %v706_v1  ;;  %v75_v19 = vadd.s32 56, %v706_v1  ;;  %v72_v20 = vadd.s32 32, %v706_v1  ;;  %v73_v21 = vadd.s32 40, %v706_v1  ;;  %p629_p4 = por %p628_p3, %p627_p2 }
  0x2c   :  { %vm137_vm0 = vcmp.eq.s32.totalorder %v82_v7, %v729_v12  ;;  %vm139_vm1 = vcmp.eq.s32.totalorder %v83_v8, %v729_v12  ;;  %vm136_vm2 = vcmp.eq.s32.totalorder %v82_v7, %v726_v11  ;;  %vm138_vm3 = vcmp.eq.s32.totalorder %v83_v8, %v726_v11 }
  0x2d   :  { %vm511_vm4 = vmpackc.low %vm139_vm1, %vm137_vm0  ;;  %vm133_vm5 = vcmp.eq.s32.totalorder %v80_v9, %v729_v12  ;;  %vm135_vm6 = vcmp.eq.s32.totalorder %v81_v10, %v729_v12  ;;  %vm132_vm7 = vcmp.eq.s32.totalorder %v80_v9, %v726_v11  ;;  %vm134_vm8 = vcmp.eq.s32.totalorder %v81_v10, %v726_v11  ;;  %p630_p5 = pnand %p629_p4, %p623_p0 }
  0x2e   :  { %512 = vmatprep.subr.msk.bf16.mxu0 %vm511_vm4, %v650_v15  ;;  %vm513_vm9 = vmpackc.low %vm138_vm3, %vm136_vm2  ;;  %vm129_vm10 = vcmp.eq.s32.totalorder %v78_v13, %v729_v12  ;;  %vm131_vm11 = vcmp.eq.s32.totalorder %v79_v14, %v729_v12  ;;  %vm128_vm15 = vcmp.eq.s32.totalorder %v78_v13, %v726_v11  ;;  %vm130_vm0 = vcmp.eq.s32.totalorder %v79_v14, %v726_v11 }
  0x2f   :  { %514 = vmatpush1.bf16.msk.msra.mxu0 %vm513_vm9, %v650_v15  ;;  %vm515_vm12 = vmpackc.low %vm135_vm6, %vm133_vm5  ;;  %vm125_vm1 = vcmp.eq.s32.totalorder %v76_v16, %v729_v12  ;;  %vm127_vm2 = vcmp.eq.s32.totalorder %v77_v17, %v729_v12  ;;  %vm124_vm5 = vcmp.eq.s32.totalorder %v76_v16, %v726_v11  ;;  %vm126_vm6 = vcmp.eq.s32.totalorder %v77_v17, %v726_v11 }
  0x30   :  { %516 = vmatprep.subr.msk.bf16.mxu0 %vm515_vm12, %v650_v15  ;;  %vm517_vm13 = vmpackc.low %vm134_vm8, %vm132_vm7  ;;  %vm121_vm7 = vcmp.eq.s32.totalorder %v74_v18, %v729_v12  ;;  %vm123_vm8 = vcmp.eq.s32.totalorder %v75_v19, %v729_v12  ;;  %vm122_vm12 = vcmp.eq.s32.totalorder %v75_v19, %v726_v11  ;;  %v70_v23 = vadd.s32 16, %v706_v1 }
  0x31   :  { %vm519_vm14 = vmpackc.low %vm131_vm11, %vm129_vm10  ;;  %vm120_vm11 = vcmp.eq.s32.totalorder %v74_v18, %v726_v11  ;;  %v71_v24 = vadd.s32 24, %v706_v1  ;;  %v69_v26 = vadd.s32 8, %v706_v1  ;;  %v98_v27 = vadd.s32 240, %v706_v1 }
  0x32   :  { %vm521_vm3 = vmpackc.low %vm130_vm0, %vm128_vm15  ;;  %v99_v28 = vadd.s32 248, %v706_v1  ;;  %v96_v29 = vadd.s32 224, %v706_v1  ;;  %v97_v30 = vadd.s32 232, %v706_v1  ;;  %v94_v31 = vadd.s32 208, %v706_v1 }
  0x33   :  { %518 = vmatpush1.bf16.msk.msra.mxu0 %vm517_vm13, %v650_v15  ;;  %vm523_vm4 = vmpackc.low %vm127_vm2, %vm125_vm1  ;;  %vm117_vm13 = vcmp.eq.s32.totalorder %v72_v20, %v729_v12  ;;  %vm116_vm1 = vcmp.eq.s32.totalorder %v72_v20, %v726_v11  ;;  %vm118_vm2 = vcmp.eq.s32.totalorder %v73_v21, %v726_v11  ;;  %v95_v32 = vadd.s32 216, %v706_v1 }
  0x34   :  { %520 = vmatprep.subr.msk.bf16.mxu0 %vm519_vm14, %v650_v15  ;;  %vm525_vm9 = vmpackc.low %vm126_vm6, %vm124_vm5  ;;  %vm119_vm14 = vcmp.eq.s32.totalorder %v73_v21, %v729_v12  ;;  %v92_v33 = vadd.s32 192, %v706_v1  ;;  %v93_v34 = vadd.s32 200, %v706_v1  ;;  %v90_v35 = vadd.s32 176, %v706_v1 }
  0x35   :  { %vm527_vm10 = vmpackc.low %vm123_vm8, %vm121_vm7  ;;  %vm112_vm7 = vcmp.eq.s32.totalorder %v70_v23, %v726_v11  ;;  %vm114_vm8 = vcmp.eq.s32.totalorder %v71_v24, %v726_v11  ;;  %v91_v36 = vadd.s32 184, %v706_v1  ;;  %v88_v37 = vadd.s32 160, %v706_v1 }
  0x36   :  { %vm529_vm15 = vmpackc.low %vm122_vm12, %vm120_vm11  ;;  %v89_v38 = vadd.s32 168, %v706_v1  ;;  %v86_v39 = vadd.s32 144, %v706_v1  ;;  %v87_v40 = vadd.s32 152, %v706_v1  ;;  %v84_v41 = vadd.s32 128, %v706_v1 }
  0x37   :  { %522 = vmatpush1.bf16.msk.msra.mxu0 %vm521_vm3, %v650_v15  ;;  %vm531_vm0 = vmpackc.low %vm119_vm14, %vm117_vm13  ;;  %vm113_vm3 = vcmp.eq.s32.totalorder %v70_v23, %v729_v12  ;;  %vm108_vm13 = vcmp.eq.s32.totalorder %v706_v1, %v726_v11  ;;  %vm110_vm14 = vcmp.eq.s32.totalorder %v69_v26, %v726_v11  ;;  %v85_v42 = vadd.s32 136, %v706_v1 }
  0x38   :  { %524 = vmatprep.subr.msk.bf16.mxu0 %vm523_vm4, %v650_v15  ;;  %vm115_vm4 = vcmp.eq.s32.totalorder %v71_v24, %v729_v12  ;;  %vm533_vm5 = vmpackc.low %vm118_vm2, %vm116_vm1  ;;  %v393_v47 = vrot.slane %v388_v45, %v713_v3  ;;  %v407_v48 = vrot.slane %v402_v46, %v713_v3  ;;  %v397_v49 = vrot.slane %v388_v45, %v716_v4 }
  0x39   :  { %vm535_vm6 = vmpackc.low %vm115_vm4, %vm113_vm3  ;;  %vm168_vm3 = vcmp.eq.s32.totalorder %v98_v27, %v726_v11  ;;  %vm170_vm4 = vcmp.eq.s32.totalorder %v99_v28, %v726_v11  ;;  %v411_v52 = vrot.slane %v402_v46, %v716_v4 }
  0x3a   :  { %vm537_vm11 = vmpackc.low %vm114_vm8, %vm112_vm7 }
  0x3b   :  { %526 = vmatpush1.bf16.msk.msra.mxu0 %vm525_vm9, %v650_v15  ;;  %vm109_vm9 = vcmp.eq.s32.totalorder %v706_v1, %v729_v12  ;;  %vm541_vm1 = vmpackc.low %vm110_vm14, %vm108_vm13 }
  0x3c   :  { %528 = vmatprep.subr.msk.bf16.mxu0 %vm527_vm10, %v650_v15  ;;  %vm111_vm10 = vcmp.eq.s32.totalorder %v69_v26, %v729_v12  ;;  %vm545_vm7 = vmpackc.low %vm170_vm4, %vm168_vm3 }
  0x3d   :  { %vm539_vm12 = vmpackc.low %vm111_vm10, %vm109_vm9  ;;  %vm164_vm9 = vcmp.eq.s32.totalorder %v96_v29, %v726_v11  ;;  %vm166_vm10 = vcmp.eq.s32.totalorder %v97_v30, %v726_v11 }
  0x3e   :  { %vm549_vm13 = vmpackc.low %vm166_vm10, %vm164_vm9 }
  0x3f   :  { %530 = vmatpush1.bf16.msk.msra.mxu0 %vm529_vm15, %v650_v15  ;;  %vm169_vm15 = vcmp.eq.s32.totalorder %v98_v27, %v729_v12 }
  0x40   :  { %532 = vmatprep.subr.msk.bf16.mxu0 %vm531_vm0, %v650_v15  ;;  %vm171_vm0 = vcmp.eq.s32.totalorder %v99_v28, %v729_v12 }
  0x41   :  { %vm543_vm2 = vmpackc.low %vm171_vm0, %vm169_vm15  ;;  %vm160_vm15 = vcmp.eq.s32.totalorder %v94_v31, %v726_v11  ;;  %vm162_vm0 = vcmp.eq.s32.totalorder %v95_v32, %v726_v11 }
  0x42   :  { %vm553_vm3 = vmpackc.low %vm162_vm0, %vm160_vm15 }
  0x43   :  { %534 = vmatpush1.bf16.msk.msra.mxu0 %vm533_vm5, %v650_v15  ;;  %vm165_vm5 = vcmp.eq.s32.totalorder %v96_v29, %v729_v12 }
  0x44   :  { %536 = vmatprep.subr.msk.bf16.mxu0 %vm535_vm6, %v650_v15  ;;  %vm167_vm6 = vcmp.eq.s32.totalorder %v97_v30, %v729_v12 }
  0x45   :  { %vm547_vm8 = vmpackc.low %vm167_vm6, %vm165_vm5  ;;  %vm156_vm5 = vcmp.eq.s32.totalorder %v92_v33, %v726_v11  ;;  %vm158_vm6 = vcmp.eq.s32.totalorder %v93_v34, %v726_v11 }
  0x46   :  { %vm557_vm9 = vmpackc.low %vm158_vm6, %vm156_vm5 }
  0x47   :  { %538 = vmatpush1.bf16.msk.msra.mxu0 %vm537_vm11, %v650_v15  ;;  %vm161_vm11 = vcmp.eq.s32.totalorder %v94_v31, %v729_v12 }
  0x48   :  { %540 = vmatprep.subr.msk.bf16.mxu0 %vm539_vm12, %v650_v15  ;;  %vm163_vm12 = vcmp.eq.s32.totalorder %v95_v32, %v729_v12 }
  0x49   :  { %vm551_vm14 = vmpackc.low %vm163_vm12, %vm161_vm11  ;;  %vm152_vm11 = vcmp.eq.s32.totalorder %v90_v35, %v726_v11  ;;  %vm154_vm12 = vcmp.eq.s32.totalorder %v91_v36, %v726_v11 }
  0x4a   :  { %vm561_vm15 = vmpackc.low %vm154_vm12, %vm152_vm11 }
  0x4b   :  { %542 = vmatpush1.bf16.msk.msra.mxu0 %vm541_vm1, %v650_v15  ;;  %vm157_vm1 = vcmp.eq.s32.totalorder %v92_v33, %v729_v12 }
  0x4c   :  { %544 = vmatprep.subr.msk.bf16.mxu0 %vm543_vm2, %v650_v15  ;;  %vm159_vm2 = vcmp.eq.s32.totalorder %v93_v34, %v729_v12 }
  0x4d   :  { %vm555_vm4 = vmpackc.low %vm159_vm2, %vm157_vm1  ;;  %vm148_vm1 = vcmp.eq.s32.totalorder %v88_v37, %v726_v11  ;;  %vm150_vm2 = vcmp.eq.s32.totalorder %v89_v38, %v726_v11 }
  0x4e   :  { %vm565_vm5 = vmpackc.low %vm150_vm2, %vm148_vm1 }
  0x4f   :  { %546 = vmatpush2.bf16.msk.msra.mxu0 %vm545_vm7, %v650_v15  ;;  %vm153_vm7 = vcmp.eq.s32.totalorder %v90_v35, %v729_v12 }
  0x50   :  { %548 = vmatprep.subr.msk.bf16.mxu0 %vm547_vm8, %v650_v15  ;;  %vm155_vm8 = vcmp.eq.s32.totalorder %v91_v36, %v729_v12 }
  0x51   :  { %vm559_vm10 = vmpackc.low %vm155_vm8, %vm153_vm7  ;;  %vm144_vm7 = vcmp.eq.s32.totalorder %v86_v39, %v726_v11  ;;  %vm146_vm8 = vcmp.eq.s32.totalorder %v87_v40, %v726_v11 }
  0x52   :  { %vm569_vm11 = vmpackc.low %vm146_vm8, %vm144_vm7 }
  0x53   :  { %550 = vmatpush2.bf16.msk.msra.mxu0 %vm549_vm13, %v650_v15  ;;  %vm149_vm13 = vcmp.eq.s32.totalorder %v88_v37, %v729_v12 }
  0x54   :  { %552 = vmatprep.subr.msk.bf16.mxu0 %vm551_vm14, %v650_v15  ;;  %vm151_vm14 = vcmp.eq.s32.totalorder %v89_v38, %v729_v12 }
  0x55   :  { %vm563_vm0 = vmpackc.low %vm151_vm14, %vm149_vm13  ;;  %vm140_vm13 = vcmp.eq.s32.totalorder %v84_v41, %v726_v11  ;;  %vm142_vm14 = vcmp.eq.s32.totalorder %v85_v42, %v726_v11 }
  0x57   :  { %554 = vmatpush2.bf16.msk.msra.mxu0 %vm553_vm3, %v650_v15  ;;  %vm145_vm3 = vcmp.eq.s32.totalorder %v86_v39, %v729_v12 }
  0x58   :  { %556 = vmatprep.subr.msk.bf16.mxu0 %vm555_vm4, %v650_v15  ;;  %vm147_vm4 = vcmp.eq.s32.totalorder %v87_v40, %v729_v12 }
  0x59   :  { %vm567_vm6 = vmpackc.low %vm147_vm4, %vm145_vm3 }
  0x5b   :  { %558 = vmatpush2.bf16.msk.msra.mxu0 %vm557_vm9, %v650_v15  ;;  %vm141_vm9 = vcmp.eq.s32.totalorder %v84_v41, %v729_v12 }
  0x5c   :  { %560 = vmatprep.subr.msk.bf16.mxu0 %vm559_vm10, %v650_v15  ;;  %vm143_vm10 = vcmp.eq.s32.totalorder %v85_v42, %v729_v12 }
  0x5d   :  { %vm571_vm12 = vmpackc.low %vm143_vm10, %vm141_vm9 }
  0x5f   :  { %562 = vmatpush2.bf16.msk.msra.mxu0 %vm561_vm15, %v650_v15  ;;  %vm573_vm15 = vmpackc.low %vm142_vm14, %vm140_vm13 }
  0x60   :  { %564 = vmatprep.subr.msk.bf16.mxu0 %vm563_vm0, %v650_v15 }
  0x63   :  { %566 = vmatpush2.bf16.msk.msra.mxu0 %vm565_vm5, %v650_v15 }
  0x64   :  { %568 = vmatprep.subr.msk.bf16.mxu0 %vm567_vm6, %v650_v15 }
  0x67   :  { %570 = vmatpush2.bf16.msk.msra.mxu0 %vm569_vm11, %v650_v15 }
  0x68   :  { %572 = vmatprep.subr.msk.bf16.mxu0 %vm571_vm12, %v650_v15 }
  0x6b   :  { %574 = vmatpush2.bf16.msk.msra.mxu0 %vm573_vm15, %v650_v15 }
  0x6e   :  { %371 = vmatmul.mubr.bf16.vlgmr.msra.gmra.mxu0 %v336_v44 }
 0x12e   :  { %v372_v50 = vpop.f32.mrf.mxu0 }
 0x12f   :  { %v400_v51 = vmul.f32 %v393_v47, %v372_v50 }
 0x130   :  { %v374_v54 = vpop.f32.mrf.mxu0 }
 0x131   :  { %v414_v55 = vadd.f32 %v407_v48, %v400_v51  ;;  %v401_v56 = vmul.f32 %v397_v49, %v374_v54 }
 0x132   :  { %v376_v58 = vpop.f32.mrf.mxu0 }
 0x133   :  { %v418_v59 = vadd.f32 %v416_v53, %v414_v55  ;;  %v415_v60 = vadd.f32 %v411_v52, %v401_v56 }
 0x134   :  { %v377_v61 = vpop.f32.mrf.mxu0 }
 0x135   :  { %v420_v62 = vmax.f32 %v418_v59, 0.0  ;;  %v419_v63 = vadd.f32 %v417_v57, %v415_v60 }
 0x137   :  { %v421_v0 = vmax.f32 %v419_v63, 0.0  ;;  %v422_v1 = vmin.f32 %v420_v62, 1.0 }
 0x139   :  { %v423_v2 = vmin.f32 %v421_v0, 1.0  ;;  %424 = vst [vmem:[#allocation10] sm:$0xff] %v422_v1 }
 0x13b   :  { %425 = vst [vmem:[#allocation10 + $0x8] sm:$0xff] %v423_v2 }
 0x13c   :  { %633 = shalt.err (!%p630_p5)
}
 0x13d   :  { %435 = dma.vmem_to_hbm [thread:$0]  %s433_s4, 256, %s875_s6, [#allocation7]  }
 0x13e   :  { %646 = dma.done.wait [#allocation7], 256  }
 0x13f   :  { %647 = vsyncadd [#allocation7], 4294967040 }
 0x140   :  { %439 = vsyncpa [#allocation6], 1 }
 0x141   :  { %440 = vsyncpa [#allocation9], 1 }
 0x142   :  { %441 = vsyncpa [#allocation7], 1 }

</bundles_post_ra>
